<compile_context>
chip_gen: v7x
topology: tpu7x:2x2x1
jax: 0.10.0
libtpu: 0.0.40
codegen_flags: <defaults>
</compile_context>

<pallas_src>
import functools

import jax
import jax.numpy as jnp
from jax import lax
from jax.experimental import pallas as pl
from jax.experimental.pallas import tpu as pltpu

HIDDEN_DIM = 16          # config.hidden_dim
EMB_DIM = 32             # config.emb_dim
VOCAB_SIZE = 64          # config.vocab_size
MAX_DEC_STEPS = 16       # fixed intra-decoder history capacity (T_max)


def _round_up(n, m):
    return (n + m - 1) // m * m


def _slab_layout():
    """Row layout of the packed small-weight slab (everything except V1)."""
    H, E = HIDDEN_DIM, EMB_DIM
    entries = (
        ("wxc_x", E, E), ("wxc_c", 2 * H, E), ("b_xc", 1, E),
        ("wih_t", E, 4 * H), ("whh_t", H, 4 * H), ("b_lstm", 1, 4 * H),
        ("wh_t", 2 * H, 2 * H), ("wsT_h", H, 2 * H), ("wsT_c", H, 2 * H),
        ("b_s", 1, 2 * H), ("v_e", 1, 2 * H),
        ("wprev_t", H, H), ("wsd_t", H, H), ("b_sd", 1, H), ("v_d", 1, H),
        ("wp_cte", 1, 2 * H), ("wp_ctd", 1, H), ("wp_h", 1, H),
        ("wp_c", 1, H), ("wp_x", 1, E), ("b_p", 1, 1),
        ("vT_h", H, H), ("vT_cte", 2 * H, H), ("vT_ctd", H, H), ("b_V", 1, H),
    )
    layout, off = {}, 0
    for name, r, c in entries:
        layout[name] = (off, r, c)
        off += _round_up(r, 8)          # keep every block sublane-aligned
    return layout, off, 128             # max cols (4H=64) <= 128 lanes


def _arg_names(has_sum, has_prev):
    names = ["x_t", "ct_e_in", "dec_h_in", "dec_c_in", "h_flat", "mask", "idx"]
    if has_sum:
        names.append("sum_ts")
    if has_prev:
        names += ["prev_pad", "t_prev"]
    names += ["slab", "v1p"]
    return tuple(names)


@functools.lru_cache(maxsize=None)
def _build_step(B, S, T_max, V_ext, has_sum, has_prev):
    """Fused single-program decode-step pallas_call (no grid)."""
    H, E = HIDDEN_DIM, EMB_DIM
    f32 = jnp.float32
    names = _arg_names(has_sum, has_prev)
    layout, _, _ = _slab_layout()
    OUT_USED = V_ext + 4 * H + S
    OUT_W = _round_up(OUT_USED, 128)    # lane-dense output slab width

    def kernel(*refs):
        r = dict(zip(names, refs))      # inputs (zip truncates)
        out_ref = refs[-1]

        def w(name):                    # static slab slice -> free ref view
            off, rows, cols = layout[name]
            return r["slab"][off:off + rows, 0:cols]

        def sigmoid(z):                 # exact identity; tanh runs on the EUP
            return 0.5 * (jnp.tanh(0.5 * z) + 1.0)

        x_t = r["x_t"][...]                         # [B, E]
        cte_in = r["ct_e_in"][...]                  # [B, 2H]
        h_in = r["dec_h_in"][...]                   # [B, H]
        c_in = r["dec_c_in"][...]                   # [B, H]
        hf = r["h_flat"][...]                       # [B*S, 2H]

        # ---- x = x_context(cat([x_t, ct_e])): weights pre-split, no concat
        x = (jnp.dot(x_t, w("wxc_x"), preferred_element_type=f32)
             + jnp.dot(cte_in, w("wxc_c"), preferred_element_type=f32)
             + w("b_xc"))                           # [B, E]

        # ---- LSTMCell (whole batch in one pair of matmuls)
        gates = (jnp.dot(x, w("wih_t"), preferred_element_type=f32)
                 + jnp.dot(h_in, w("whh_t"), preferred_element_type=f32)
                 + w("b_lstm"))                     # [B, 4H]
        i_g = sigmoid(gates[:, 0:H])
        f_g = sigmoid(gates[:, H:2 * H])
        g_g = jnp.tanh(gates[:, 2 * H:3 * H])
        o_g = sigmoid(gates[:, 3 * H:4 * H])
        c_new = f_g * c_in + i_g * g_g              # [B, H]
        h_new = o_g * jnp.tanh(c_new)               # [B, H]

        # ---- intra-temporal encoder attention: one [B*S,2H]x[2H,2H] MXU
        # matmul, then batched VPU add/tanh/mul + XLU lane-reduce (no per-b
        # M=1 dot_generals, no concats).
        et_flat = jnp.dot(hf, w("wh_t"), preferred_element_type=f32)
        dec_fea = (jnp.dot(h_new, w("wsT_h"), preferred_element_type=f32)
                   + jnp.dot(c_new, w("wsT_c"), preferred_element_type=f32)
                   + w("b_s"))                      # [B, 2H]
        hf3 = hf.reshape(B, S, 2 * H)               # layout-free (S % 8 == 0)
        et3 = jnp.tanh(et_flat.reshape(B, S, 2 * H) + dec_fea[:, None, :])
        scores = jnp.sum(et3 * w("v_e")[None], axis=2)          # [B, S]

        exp_et = jnp.exp(scores)        # tanh-bounded logits (matches ref)
        if has_sum:
            s_prev = r["sum_ts"][...]
            et1 = exp_et * pl.reciprocal(s_prev, approx=False)
            sum_new = s_prev + exp_et
        else:
            et1 = exp_et
            sum_new = 1e-10 + exp_et

        at = et1 * r["mask"][...]                   # [B, S]
        norm = jnp.sum(at, axis=1, keepdims=True)
        # 1e-10 guards an all-masked row; no-op otherwise in fp32
        at = at * pl.reciprocal(norm + 1e-10, approx=False)
        ct_e = jnp.sum(at[:, :, None] * hf3, axis=1)            # [B, 2H]

        # ---- intra-decoder attention (fixed T_max + validity mask)
        if has_prev:
            prev = r["prev_pad"][...]               # [B, T_max, H]
            t_valid = r["t_prev"][0]                # SMEM scalar
            tmask = (lax.broadcasted_iota(jnp.int32, (B, T_max), 1)
                     < t_valid).astype(f32)
            e_flat = jnp.dot(prev.reshape(B * T_max, H), w("wprev_t"),
                             preferred_element_type=f32)
            decq = (jnp.dot(h_new, w("wsd_t"), preferred_element_type=f32)
                    + w("b_sd"))                    # [B, H]
            e3 = jnp.tanh(e_flat.reshape(B, T_max, H) + decq[:, None, :])
            sc = jnp.sum(e3 * w("v_d")[None], axis=2)           # [B, T_max]
            sc = sc + (tmask - 1.0) * 1e9           # mask invalid slots
            m = jnp.max(sc, axis=1, keepdims=True)
            es = jnp.exp(sc - m) * tmask
            a_d = es * pl.reciprocal(jnp.sum(es, axis=1, keepdims=True),
                                     approx=False)
            ct_d = jnp.sum(a_d[:, :, None] * prev, axis=1)      # [B, H]
        else:
            ct_d = jnp.zeros((B, H), f32)

        # ---- p_gen: multiply + lane-reduce on VPU/XLU (no M=1 MXU passes)
        def rowdot(vec, w_row):                     # [B,k] x [1,k] -> [B,1]
            return jnp.sum(vec * w_row, axis=1, keepdims=True)

        p = (rowdot(ct_e, w("wp_cte")) + rowdot(ct_d, w("wp_ctd"))
             + rowdot(h_new, w("wp_h")) + rowdot(c_new, w("wp_c"))
             + rowdot(x, w("wp_x")) + w("b_p"))                 # [B, 1]
        p_gen = sigmoid(p)

        # ---- vocab distribution (OOV columns pre-padded with weight 0 /
        # bias -1e9, so the softmax already equals cat([softmax(.), zeros]))
        hid = (jnp.dot(h_new, w("vT_h"), preferred_element_type=f32)
               + jnp.dot(ct_e, w("vT_cte"), preferred_element_type=f32)
               + jnp.dot(ct_d, w("vT_ctd"), preferred_element_type=f32)
               + w("b_V"))                                      # [B, H]
        logits = (jnp.dot(hid, r["v1p"][0:H, :], preferred_element_type=f32)
                  + r["v1p"][H:H + 1, :])                       # [B, V_ext]
        mlog = jnp.max(logits, axis=1, keepdims=True)
        ex = jnp.exp(logits - mlog)
        vocab = ex * pl.reciprocal(jnp.sum(ex, axis=1, keepdims=True),
                                   approx=False)
        vocab = p_gen * vocab                                   # [B, V_ext]
        attn_sc = (1.0 - p_gen) * at                            # [B, S]

        # ---- scatter_add(1, enc_batch_extend_vocab, attn_sc): batched
        # one-hot compare + multiply + sublane reduce (fine at toy V_ext).
        iota_v = lax.broadcasted_iota(jnp.int32, (B, S, V_ext), 2)
        onehot = (iota_v == r["idx"][...][:, :, None]).astype(f32)
        final = vocab + jnp.sum(attn_sc[:, :, None] * onehot, axis=1)

        # ---- single lane-padded output slab: one dense store
        pieces = [final, h_new, c_new, ct_e, sum_new]
        if OUT_W > OUT_USED:
            pieces.append(jnp.zeros((B, OUT_W - OUT_USED), f32))
        out_ref[...] = jnp.concatenate(pieces, axis=1)          # [B, OUT_W]

    vmem = pl.BlockSpec(memory_space=pltpu.MemorySpace.VMEM)
    smem = pl.BlockSpec(memory_space=pltpu.MemorySpace.SMEM)
    in_specs = [smem if n == "t_prev" else vmem for n in names]
    return pl.pallas_call(
        kernel,
        in_specs=in_specs,
        out_specs=vmem,
        out_shape=jax.ShapeDtypeStruct((B, OUT_W), jnp.float32),
    )


def prepare_params(params, n_extra):
    """Pack all small weights into one lane-padded slab + the V1 slab."""
    H, E, V = HIDDEN_DIM, EMB_DIM, VOCAB_SIZE
    f32 = jnp.float32
    pieces = {}
    wxc_t = params["x_context_w"].T                       # [E+2H, E]
    pieces["wxc_x"], pieces["wxc_c"] = wxc_t[:E, :], wxc_t[E:, :]
    pieces["b_xc"] = params["x_context_b"].reshape(1, E)
    pieces["wih_t"] = params["lstm_w_ih"].T               # [E, 4H]
    pieces["whh_t"] = params["lstm_w_hh"].T               # [H, 4H]
    pieces["b_lstm"] = (params["lstm_b_ih"] + params["lstm_b_hh"]).reshape(1, 4 * H)
    pieces["wh_t"] = params["enc_W_h"].T
    ws_t = params["enc_W_s"].T                            # [2H, 2H]
    pieces["wsT_h"], pieces["wsT_c"] = ws_t[:H, :], ws_t[H:, :]
    pieces["b_s"] = params["enc_b_s"].reshape(1, 2 * H)
    pieces["v_e"] = params["enc_v"].reshape(1, 2 * H)
    pieces["wprev_t"] = params["dec_W_prev"].T
    pieces["wsd_t"] = params["dec_W_s"].T
    pieces["b_sd"] = params["dec_b_s"].reshape(1, H)
    pieces["v_d"] = params["dec_v"].reshape(1, H)
    wp = params["p_gen_w"]                                # [1, 5H+E]
    pieces["wp_cte"] = wp[:, 0:2 * H]
    pieces["wp_ctd"] = wp[:, 2 * H:3 * H]
    pieces["wp_h"] = wp[:, 3 * H:4 * H]
    pieces["wp_c"] = wp[:, 4 * H:5 * H]
    pieces["wp_x"] = wp[:, 5 * H:5 * H + E]
    pieces["b_p"] = params["p_gen_b"].reshape(1, 1)
    v_t = params["V_w"].T                                 # [4H, H]
    pieces["vT_h"], pieces["vT_cte"], pieces["vT_ctd"] = (
        v_t[:H, :], v_t[H:3 * H, :], v_t[3 * H:, :])
    pieces["b_V"] = params["V_b"].reshape(1, H)

    layout, rows, width = _slab_layout()
    slab = jnp.zeros((rows, width), f32)
    for name, arr in pieces.items():
        off, r_, c_ = layout[name]
        assert arr.shape == (r_, c_), (name, arr.shape, (r_, c_))
        slab = slab.at[off:off + r_, 0:c_].set(arr.astype(f32))

    V_ext = V + n_extra
    v1_t = params["V1_w"].T                               # [H, V]
    b_v1 = params["V1_b"]
    if n_extra:
        v1_t = jnp.concatenate([v1_t, jnp.zeros((H, n_extra), f32)], axis=1)
        b_v1 = jnp.concatenate([b_v1, jnp.full((n_extra,), -1e9, f32)])
    v1p = jnp.zeros((_round_up(H + 1, 8), V_ext), f32)
    v1p = v1p.at[0:H, :].set(v1_t).at[H, :].set(b_v1)
    return {"slab": slab, "v1p": v1p}


def decoder_forward(kparams, x_t, s_t, enc_out, enc_padding_mask, ct_e,
                    extra_zeros, enc_batch_extend_vocab, sum_temporal_srcs,
                    prev_s, t_max=MAX_DEC_STEPS):
    """One decode step; mirrors Decoder.forward of the PyTorch reference."""
    H = HIDDEN_DIM
    B, S, _ = enc_out.shape
    n_extra = 0 if extra_zeros is None else extra_zeros.shape[1]
    V_ext = VOCAB_SIZE + n_extra
    assert kparams["v1p"].shape[1] == V_ext

    dec_h, dec_c = s_t
    has_sum = sum_temporal_srcs is not None
    has_prev = prev_s is not None

    data = {
        "x_t": x_t, "ct_e_in": ct_e, "dec_h_in": dec_h, "dec_c_in": dec_c,
        "h_flat": enc_out.reshape(B * S, 2 * H),   # free contiguous reshape
        "mask": enc_padding_mask.astype(jnp.float32),
        "idx": enc_batch_extend_vocab.astype(jnp.int32),
        "slab": kparams["slab"], "v1p": kparams["v1p"],
    }
    if has_sum:
        data["sum_ts"] = sum_temporal_srcs
    if has_prev:
        t = prev_s.shape[1]
        assert t <= t_max, "increase MAX_DEC_STEPS for longer decodes"
        data["prev_pad"] = jnp.pad(prev_s, ((0, 0), (0, t_max - t), (0, 0)))
        data["t_prev"] = jnp.full((1,), t, jnp.int32)

    names = _arg_names(has_sum, has_prev)
    call = _build_step(B, S, t_max, V_ext, has_sum, has_prev)
    out = call(*[data[n] for n in names])

    final_dist = out[:, 0:V_ext]
    dec_h_new = out[:, V_ext:V_ext + H]
    dec_c_new = out[:, V_ext + H:V_ext + 2 * H]
    ct_e_new = out[:, V_ext + 2 * H:V_ext + 4 * H]
    sum_new = out[:, V_ext + 4 * H:V_ext + 4 * H + S]

    # prev_s history grows by one row every step (PyTorch semantics); the
    # padding to T_max is internal to this wrapper.
    if has_prev:
        prev_s_new = jnp.concatenate([prev_s, dec_h_new[:, None, :]], axis=1)
    else:
        prev_s_new = dec_h_new[:, None, :]
    return final_dist, (dec_h_new, dec_c_new), ct_e_new, sum_new, prev_s_new


def init_params(key):
    H, E, V = HIDDEN_DIM, EMB_DIM, VOCAB_SIZE
    ks = jax.random.split(key, 18)
    std, mag = 0.1, 0.05

    def nrm(k, shape):
        return std * jax.random.normal(k, shape, jnp.float32)

    def uni(k, shape):
        return jax.random.uniform(k, shape, jnp.float32, -mag, mag)

    # init_lstm_wt: forget-gate bias chunk set to 1 in both biases
    b_ih = jnp.zeros((4 * H,), jnp.float32).at[H:2 * H].set(1.0)
    b_hh = jnp.zeros((4 * H,), jnp.float32).at[H:2 * H].set(1.0)
    return {
        "x_context_w": nrm(ks[0], (E, 2 * H + E)), "x_context_b": nrm(ks[1], (E,)),
        "lstm_w_ih": uni(ks[2], (4 * H, E)), "lstm_w_hh": uni(ks[3], (4 * H, H)),
        "lstm_b_ih": b_ih, "lstm_b_hh": b_hh,
        "enc_W_h": nrm(ks[4], (2 * H, 2 * H)), "enc_W_s": nrm(ks[5], (2 * H, 2 * H)),
        "enc_b_s": nrm(ks[6], (2 * H,)), "enc_v": nrm(ks[7], (1, 2 * H)),
        "dec_W_prev": nrm(ks[8], (H, H)), "dec_W_s": nrm(ks[9], (H, H)),
        "dec_b_s": nrm(ks[10], (H,)), "dec_v": nrm(ks[11], (1, H)),
        "p_gen_w": nrm(ks[12], (1, 5 * H + E)), "p_gen_b": nrm(ks[13], (1,)),
        "V_w": nrm(ks[14], (H, 4 * H)), "V_b": nrm(ks[15], (H,)),
        "V1_w": nrm(ks[16], (V, H)), "V1_b": nrm(ks[17], (V,)),
    }


def reference_step(params, x_t, s_t, enc_out, enc_padding_mask, ct_e,
                   extra_zeros, enc_batch_extend_vocab, sum_temporal_srcs,
                   prev_s):
    """Pure-JAX mirror of the PyTorch Decoder.forward (correctness oracle)."""
    x = (jnp.concatenate([x_t, ct_e], 1) @ params["x_context_w"].T
         + params["x_context_b"])
    h0, c0 = s_t
    gates = (x @ params["lstm_w_ih"].T + params["lstm_b_ih"]
             + h0 @ params["lstm_w_hh"].T + params["lstm_b_hh"])
    ig, fg, gg, og = jnp.split(gates, 4, axis=1)
    ig, fg, og = jax.nn.sigmoid(ig), jax.nn.sigmoid(fg), jax.nn.sigmoid(og)
    gg = jnp.tanh(gg)
    c = fg * c0 + ig * gg
    h = og * jnp.tanh(c)
    st_hat = jnp.concatenate([h, c], 1)

    et = enc_out @ params["enc_W_h"].T
    dec_fea = st_hat @ params["enc_W_s"].T + params["enc_b_s"]
    et = jnp.tanh(et + dec_fea[:, None, :])
    et = jnp.einsum("bsd,d->bs", et, params["enc_v"][0])
    exp_et = jnp.exp(et)
    if sum_temporal_srcs is None:
        et1, sum_new = exp_et, 1e-10 + exp_et
    else:
        et1, sum_new = exp_et / sum_temporal_srcs, sum_temporal_srcs + exp_et
    at = et1 * enc_padding_mask
    at = at / at.sum(1, keepdims=True)
    ct_e_new = jnp.einsum("bs,bsd->bd", at, enc_out)

    if prev_s is None:
        ct_d = jnp.zeros_like(h)
        prev_new = h[:, None, :]
    else:
        etd = prev_s @ params["dec_W_prev"].T
        dfe = h @ params["dec_W_s"].T + params["dec_b_s"]
        etd = jnp.tanh(etd + dfe[:, None, :])
        etd = jnp.einsum("bth,h->bt", etd, params["dec_v"][0])
        ad = jax.nn.softmax(etd, axis=1)
        ct_d = jnp.einsum("bt,bth->bh", ad, prev_s)
        prev_new = jnp.concatenate([prev_s, h[:, None, :]], 1)

    p_in = jnp.concatenate([ct_e_new, ct_d, st_hat, x], 1)
    p_gen = jax.nn.sigmoid(p_in @ params["p_gen_w"].T + params["p_gen_b"])
    out = jnp.concatenate([h, ct_e_new, ct_d], 1)
    out = out @ params["V_w"].T + params["V_b"]
    out = out @ params["V1_w"].T + params["V1_b"]
    vocab = p_gen * jax.nn.softmax(out, axis=1)
    attn_ = (1.0 - p_gen) * at
    if extra_zeros is not None:
        vocab = jnp.concatenate([vocab, extra_zeros], 1)
    V_ext = vocab.shape[1]
    onehot = jax.nn.one_hot(enc_batch_extend_vocab, V_ext, dtype=vocab.dtype)
    final = vocab + jnp.einsum("bs,bsv->bv", attn_, onehot)
    return final, (h, c), ct_e_new, sum_new, prev_new


if __name__ == "__main__":
    key = jax.random.PRNGKey(0)
    kp, kh, ki, kx, ks1, ks2 = jax.random.split(key, 6)

    B, S = 2, 8
    H, E, V = HIDDEN_DIM, EMB_DIM, VOCAB_SIZE
    n_extra = 8                       # copy-mechanism OOV slots
    V_ext = V + n_extra

    params = init_params(kp)
    kparams = prepare_params(params, n_extra)

    enc_out = jax.random.normal(kh, (B, S, 2 * H), jnp.float32)
    enc_padding_mask = jnp.array([[1, 1, 1, 1, 1, 1, 1, 1],
                                  [1, 1, 1, 1, 1, 1, 0, 0]], jnp.float32)
    enc_batch_extend_vocab = jax.random.randint(ki, (B, S), 0, V_ext)
    extra_zeros = jnp.zeros((B, n_extra), jnp.float32)

    x_steps = jax.random.normal(kx, (3, B, E), jnp.float32)
    s_t = (jax.random.normal(ks1, (B, H), jnp.float32),
           jax.random.normal(ks2, (B, H), jnp.float32))
    ct_e = jnp.zeros((B, 2 * H), jnp.float32)
    sum_ts, prev_s = None, None

    s_t_r, ct_e_r, sum_r, prev_r = s_t, ct_e, None, None

    def close(a, b):
        return bool(jnp.allclose(a, b, atol=1e-3, rtol=1e-3))

    for step in range(3):             # step 0: first-step variant; 1,2: padded
        x_t = x_steps[step]
        final, s_t, ct_e, sum_ts, prev_s = decoder_forward(
            kparams, x_t, s_t, enc_out, enc_padding_mask, ct_e, extra_zeros,
            enc_batch_extend_vocab, sum_ts, prev_s)
        final_r, s_t_r, ct_e_r, sum_r, prev_r = reference_step(
            params, x_t, s_t_r, enc_out, enc_padding_mask, ct_e_r, extra_zeros,
            enc_batch_extend_vocab, sum_r, prev_r)
        jax.block_until_ready((final, s_t, ct_e, sum_ts, prev_s))

        assert final.shape == (B, V_ext) and sum_ts.shape == (B, S)
        assert s_t[0].shape == (B, H) and s_t[1].shape == (B, H)
        assert ct_e.shape == (B, 2 * H)
        assert bool(jnp.isfinite(final).all())
        # final_dist is a probability distribution: rows sum to ~1
        assert bool(jnp.allclose(final.sum(axis=1), 1.0, atol=1e-2))
        # match the pure-JAX reference of the PyTorch module
        assert close(final, final_r), f"final mismatch at step {step}"
        assert close(s_t[0], s_t_r[0]) and close(s_t[1], s_t_r[1])
        assert close(ct_e, ct_e_r) and close(sum_ts, sum_r)
        assert close(prev_s, prev_r)

    assert prev_s.shape == (B, 3, H)
    print("KERNEL_OK")
</pallas_src>

<mosaic_0001>
module attributes {stable_mosaic.version = 11 : i64} {
  func.func @kernel(%arg0: memref<2x32xf32, #tpu.memory_space<vmem>>, %arg1: memref<2x32xf32, #tpu.memory_space<vmem>>, %arg2: memref<2x16xf32, #tpu.memory_space<vmem>>, %arg3: memref<2x16xf32, #tpu.memory_space<vmem>>, %arg4: memref<16x32xf32, #tpu.memory_space<vmem>>, %arg5: memref<2x8xf32, #tpu.memory_space<vmem>>, %arg6: memref<2x8xi32, #tpu.memory_space<vmem>>, %arg7: memref<376x128xf32, #tpu.memory_space<vmem>>, %arg8: memref<24x72xf32, #tpu.memory_space<vmem>>, %arg9: memref<2x256xf32, #tpu.memory_space<vmem>>) attributes {dimension_semantics = [], scalar_prefetch = 0 : i64, scratch_operands = 0 : i64, tpu.core_type = #tpu.core_type<tc>} {
    %c0 = arith.constant 0 : index
    %c0_0 = arith.constant 0 : index
    %0 = vector.load %arg0[%c0, %c0_0] : memref<2x32xf32, #tpu.memory_space<vmem>>, vector<2x32xf32>
    %c0_1 = arith.constant 0 : index
    %c0_2 = arith.constant 0 : index
    %1 = vector.load %arg1[%c0_1, %c0_2] : memref<2x32xf32, #tpu.memory_space<vmem>>, vector<2x32xf32>
    %c0_3 = arith.constant 0 : index
    %c0_4 = arith.constant 0 : index
    %2 = vector.load %arg2[%c0_3, %c0_4] : memref<2x16xf32, #tpu.memory_space<vmem>>, vector<2x16xf32>
    %c0_5 = arith.constant 0 : index
    %c0_6 = arith.constant 0 : index
    %3 = vector.load %arg3[%c0_5, %c0_6] : memref<2x16xf32, #tpu.memory_space<vmem>>, vector<2x16xf32>
    %c0_7 = arith.constant 0 : index
    %c0_8 = arith.constant 0 : index
    %4 = vector.load %arg4[%c0_7, %c0_8] : memref<16x32xf32, #tpu.memory_space<vmem>>, vector<16x32xf32>
    %c0_9 = arith.constant 0 : index
    %c0_10 = arith.constant 0 : index
    %5 = vector.load %arg7[%c0_9, %c0_10] : memref<376x128xf32, #tpu.memory_space<vmem>>, vector<32x32xf32>
    %cst = arith.constant dense<0.000000e+00> : vector<2x32xf32>
    %6 = tpu.matmul %0, %5, %cst {dimension_numbers = #tpu.dot_dimension_numbers<[1], [0], [0], [1], [0, 0, 1, 1], [], []>} : vector<2x32xf32>, vector<32x32xf32>, vector<2x32xf32> -> vector<2x32xf32>
    %c32 = arith.constant 32 : index
    %c0_11 = arith.constant 0 : index
    %7 = vector.load %arg7[%c32, %c0_11] : memref<376x128xf32, #tpu.memory_space<vmem>>, vector<32x32xf32>
    %cst_12 = arith.constant dense<0.000000e+00> : vector<2x32xf32>
    %8 = tpu.matmul %1, %7, %cst_12 {dimension_numbers = #tpu.dot_dimension_numbers<[1], [0], [0], [1], [0, 0, 1, 1], [], []>} : vector<2x32xf32>, vector<32x32xf32>, vector<2x32xf32> -> vector<2x32xf32>
    %9 = arith.addf %6, %8 : vector<2x32xf32>
    %c64 = arith.constant 64 : index
    %c0_13 = arith.constant 0 : index
    %10 = vector.load %arg7[%c64, %c0_13] : memref<376x128xf32, #tpu.memory_space<vmem>>, vector<1x32xf32>
    %11 = vector.broadcast %10 : vector<1x32xf32> to vector<2x32xf32>
    %12 = arith.addf %9, %11 : vector<2x32xf32>
    %c72 = arith.constant 72 : index
    %c0_14 = arith.constant 0 : index
    %13 = vector.load %arg7[%c72, %c0_14] : memref<376x128xf32, #tpu.memory_space<vmem>>, vector<32x64xf32>
    %cst_15 = arith.constant dense<0.000000e+00> : vector<2x64xf32>
    %14 = tpu.matmul %12, %13, %cst_15 {dimension_numbers = #tpu.dot_dimension_numbers<[1], [0], [0], [1], [0, 0, 1, 1], [], []>} : vector<2x32xf32>, vector<32x64xf32>, vector<2x64xf32> -> vector<2x64xf32>
    %c104 = arith.constant 104 : index
    %c0_16 = arith.constant 0 : index
    %15 = vector.load %arg7[%c104, %c0_16] : memref<376x128xf32, #tpu.memory_space<vmem>>, vector<16x64xf32>
    %cst_17 = arith.constant dense<0.000000e+00> : vector<2x64xf32>
    %16 = tpu.matmul %2, %15, %cst_17 {dimension_numbers = #tpu.dot_dimension_numbers<[1], [0], [0], [1], [0, 0, 1, 1], [], []>} : vector<2x16xf32>, vector<16x64xf32>, vector<2x64xf32> -> vector<2x64xf32>
    %17 = arith.addf %14, %16 : vector<2x64xf32>
    %c120 = arith.constant 120 : index
    %c0_18 = arith.constant 0 : index
    %18 = vector.load %arg7[%c120, %c0_18] : memref<376x128xf32, #tpu.memory_space<vmem>>, vector<1x64xf32>
    %19 = vector.broadcast %18 : vector<1x64xf32> to vector<2x64xf32>
    %20 = arith.addf %17, %19 : vector<2x64xf32>
    %21 = vector.extract_strided_slice %20 {offsets = [0, 0], sizes = [2, 16], strides = [1, 1]} : vector<2x64xf32> to vector<2x16xf32>
    %cst_19 = arith.constant 5.000000e-01 : f32
    %22 = vector.broadcast %cst_19 : f32 to vector<2x16xf32>
    %23 = arith.mulf %22, %21 : vector<2x16xf32>
    %24 = math.tanh %23 : vector<2x16xf32>
    %cst_20 = arith.constant 1.000000e+00 : f32
    %25 = vector.broadcast %cst_20 : f32 to vector<2x16xf32>
    %26 = arith.addf %24, %25 : vector<2x16xf32>
    %cst_21 = arith.constant 5.000000e-01 : f32
    %27 = vector.broadcast %cst_21 : f32 to vector<2x16xf32>
    %28 = arith.mulf %27, %26 : vector<2x16xf32>
    %29 = vector.extract_strided_slice %20 {offsets = [0, 16], sizes = [2, 16], strides = [1, 1]} : vector<2x64xf32> to vector<2x16xf32>
    %cst_22 = arith.constant 5.000000e-01 : f32
    %30 = vector.broadcast %cst_22 : f32 to vector<2x16xf32>
    %31 = arith.mulf %30, %29 : vector<2x16xf32>
    %32 = math.tanh %31 : vector<2x16xf32>
    %cst_23 = arith.constant 1.000000e+00 : f32
    %33 = vector.broadcast %cst_23 : f32 to vector<2x16xf32>
    %34 = arith.addf %32, %33 : vector<2x16xf32>
    %cst_24 = arith.constant 5.000000e-01 : f32
    %35 = vector.broadcast %cst_24 : f32 to vector<2x16xf32>
    %36 = arith.mulf %35, %34 : vector<2x16xf32>
    %37 = vector.extract_strided_slice %20 {offsets = [0, 32], sizes = [2, 16], strides = [1, 1]} : vector<2x64xf32> to vector<2x16xf32>
    %38 = math.tanh %37 : vector<2x16xf32>
    %39 = vector.extract_strided_slice %20 {offsets = [0, 48], sizes = [2, 16], strides = [1, 1]} : vector<2x64xf32> to vector<2x16xf32>
    %cst_25 = arith.constant 5.000000e-01 : f32
    %40 = vector.broadcast %cst_25 : f32 to vector<2x16xf32>
    %41 = arith.mulf %40, %39 : vector<2x16xf32>
    %42 = math.tanh %41 : vector<2x16xf32>
    %cst_26 = arith.constant 1.000000e+00 : f32
    %43 = vector.broadcast %cst_26 : f32 to vector<2x16xf32>
    %44 = arith.addf %42, %43 : vector<2x16xf32>
    %cst_27 = arith.constant 5.000000e-01 : f32
    %45 = vector.broadcast %cst_27 : f32 to vector<2x16xf32>
    %46 = arith.mulf %45, %44 : vector<2x16xf32>
    %47 = arith.mulf %36, %3 : vector<2x16xf32>
    %48 = arith.mulf %28, %38 : vector<2x16xf32>
    %49 = arith.addf %47, %48 : vector<2x16xf32>
    %50 = math.tanh %49 : vector<2x16xf32>
    %51 = arith.mulf %46, %50 : vector<2x16xf32>
    %c128 = arith.constant 128 : index
    %c0_28 = arith.constant 0 : index
    %52 = vector.load %arg7[%c128, %c0_28] : memref<376x128xf32, #tpu.memory_space<vmem>>, vector<32x32xf32>
    %cst_29 = arith.constant dense<0.000000e+00> : vector<16x32xf32>
    %53 = tpu.matmul %4, %52, %cst_29 {dimension_numbers = #tpu.dot_dimension_numbers<[1], [0], [0], [1], [0, 0, 1, 1], [], []>} : vector<16x32xf32>, vector<32x32xf32>, vector<16x32xf32> -> vector<16x32xf32>
    %c160 = arith.constant 160 : index
    %c0_30 = arith.constant 0 : index
    %54 = vector.load %arg7[%c160, %c0_30] : memref<376x128xf32, #tpu.memory_space<vmem>>, vector<16x32xf32>
    %cst_31 = arith.constant dense<0.000000e+00> : vector<2x32xf32>
    %55 = tpu.matmul %51, %54, %cst_31 {dimension_numbers = #tpu.dot_dimension_numbers<[1], [0], [0], [1], [0, 0, 1, 1], [], []>} : vector<2x16xf32>, vector<16x32xf32>, vector<2x32xf32> -> vector<2x32xf32>
    %c176 = arith.constant 176 : index
    %c0_32 = arith.constant 0 : index
    %56 = vector.load %arg7[%c176, %c0_32] : memref<376x128xf32, #tpu.memory_space<vmem>>, vector<16x32xf32>
    %cst_33 = arith.constant dense<0.000000e+00> : vector<2x32xf32>
    %57 = tpu.matmul %49, %56, %cst_33 {dimension_numbers = #tpu.dot_dimension_numbers<[1], [0], [0], [1], [0, 0, 1, 1], [], []>} : vector<2x16xf32>, vector<16x32xf32>, vector<2x32xf32> -> vector<2x32xf32>
    %58 = arith.addf %55, %57 : vector<2x32xf32>
    %c192 = arith.constant 192 : index
    %c0_34 = arith.constant 0 : index
    %59 = vector.load %arg7[%c192, %c0_34] : memref<376x128xf32, #tpu.memory_space<vmem>>, vector<1x32xf32>
    %60 = vector.broadcast %59 : vector<1x32xf32> to vector<2x32xf32>
    %61 = arith.addf %58, %60 : vector<2x32xf32>
    %62 = vector.shape_cast %4 : vector<16x32xf32> to vector<2x8x32xf32>
    %63 = vector.shape_cast %53 : vector<16x32xf32> to vector<2x8x32xf32>
    %64 = vector.shape_cast %61 : vector<2x32xf32> to vector<2x1x32xf32>
    %65 = vector.broadcast %64 : vector<2x1x32xf32> to vector<2x8x32xf32>
    %66 = arith.addf %63, %65 : vector<2x8x32xf32>
    %67 = math.tanh %66 : vector<2x8x32xf32>
    %c200 = arith.constant 200 : index
    %c0_35 = arith.constant 0 : index
    %68 = vector.load %arg7[%c200, %c0_35] : memref<376x128xf32, #tpu.memory_space<vmem>>, vector<1x32xf32>
    %69 = vector.shape_cast %68 : vector<1x32xf32> to vector<1x1x32xf32>
    %70 = vector.broadcast %69 : vector<1x1x32xf32> to vector<2x8x32xf32>
    %71 = arith.mulf %67, %70 : vector<2x8x32xf32>
    %cst_36 = arith.constant dense<0.000000e+00> : vector<2x8xf32>
    %72 = vector.multi_reduction <add>, %71, %cst_36 [2] : vector<2x8x32xf32> to vector<2x8xf32>
    %73 = math.exp %72 : vector<2x8xf32>
    %cst_37 = arith.constant 1.000000e-10 : f32
    %74 = vector.broadcast %cst_37 : f32 to vector<2x8xf32>
    %75 = arith.addf %74, %73 : vector<2x8xf32>
    %c0_38 = arith.constant 0 : index
    %c0_39 = arith.constant 0 : index
    %76 = vector.load %arg5[%c0_38, %c0_39] : memref<2x8xf32, #tpu.memory_space<vmem>>, vector<2x8xf32>
    %77 = arith.mulf %73, %76 : vector<2x8xf32>
    %cst_40 = arith.constant dense<0.000000e+00> : vector<2xf32>
    %78 = vector.multi_reduction <add>, %77, %cst_40 [1] : vector<2x8xf32> to vector<2xf32>
    %79 = vector.shape_cast %78 : vector<2xf32> to vector<2x1xf32>
    %cst_41 = arith.constant 1.000000e-10 : f32
    %80 = vector.broadcast %cst_41 : f32 to vector<2x1xf32>
    %81 = arith.addf %79, %80 : vector<2x1xf32>
    %82 = tpu.reciprocal %81 : vector<2x1xf32> -> vector<2x1xf32>
    %83 = vector.broadcast %82 : vector<2x1xf32> to vector<2x8xf32>
    %84 = arith.mulf %77, %83 : vector<2x8xf32>
    %85 = vector.shape_cast %84 : vector<2x8xf32> to vector<2x8x1xf32>
    %86 = vector.broadcast %85 : vector<2x8x1xf32> to vector<2x8x32xf32>
    %87 = arith.mulf %86, %62 : vector<2x8x32xf32>
    %cst_42 = arith.constant dense<0.000000e+00> : vector<2x32xf32>
    %88 = vector.multi_reduction <add>, %87, %cst_42 [1] : vector<2x8x32xf32> to vector<2x32xf32>
    %cst_43 = arith.constant 0.000000e+00 : f32
    %89 = vector.broadcast %cst_43 : f32 to vector<2x16xf32>
    %c256 = arith.constant 256 : index
    %c0_44 = arith.constant 0 : index
    %90 = vector.load %arg7[%c256, %c0_44] : memref<376x128xf32, #tpu.memory_space<vmem>>, vector<1x32xf32>
    %91 = vector.broadcast %90 : vector<1x32xf32> to vector<2x32xf32>
    %92 = arith.mulf %88, %91 : vector<2x32xf32>
    %cst_45 = arith.constant dense<0.000000e+00> : vector<2xf32>
    %93 = vector.multi_reduction <add>, %92, %cst_45 [1] : vector<2x32xf32> to vector<2xf32>
    %94 = vector.shape_cast %93 : vector<2xf32> to vector<2x1xf32>
    %c264 = arith.constant 264 : index
    %c0_46 = arith.constant 0 : index
    %95 = vector.load %arg7[%c264, %c0_46] : memref<376x128xf32, #tpu.memory_space<vmem>>, vector<1x16xf32>
    %96 = vector.broadcast %95 : vector<1x16xf32> to vector<2x16xf32>
    %97 = arith.mulf %89, %96 : vector<2x16xf32>
    %cst_47 = arith.constant dense<0.000000e+00> : vector<2xf32>
    %98 = vector.multi_reduction <add>, %97, %cst_47 [1] : vector<2x16xf32> to vector<2xf32>
    %99 = vector.shape_cast %98 : vector<2xf32> to vector<2x1xf32>
    %100 = arith.addf %94, %99 : vector<2x1xf32>
    %c272 = arith.constant 272 : index
    %c0_48 = arith.constant 0 : index
    %101 = vector.load %arg7[%c272, %c0_48] : memref<376x128xf32, #tpu.memory_space<vmem>>, vector<1x16xf32>
    %102 = vector.broadcast %101 : vector<1x16xf32> to vector<2x16xf32>
    %103 = arith.mulf %51, %102 : vector<2x16xf32>
    %cst_49 = arith.constant dense<0.000000e+00> : vector<2xf32>
    %104 = vector.multi_reduction <add>, %103, %cst_49 [1] : vector<2x16xf32> to vector<2xf32>
    %105 = vector.shape_cast %104 : vector<2xf32> to vector<2x1xf32>
    %106 = arith.addf %100, %105 : vector<2x1xf32>
    %c280 = arith.constant 280 : index
    %c0_50 = arith.constant 0 : index
    %107 = vector.load %arg7[%c280, %c0_50] : memref<376x128xf32, #tpu.memory_space<vmem>>, vector<1x16xf32>
    %108 = vector.broadcast %107 : vector<1x16xf32> to vector<2x16xf32>
    %109 = arith.mulf %49, %108 : vector<2x16xf32>
    %cst_51 = arith.constant dense<0.000000e+00> : vector<2xf32>
    %110 = vector.multi_reduction <add>, %109, %cst_51 [1] : vector<2x16xf32> to vector<2xf32>
    %111 = vector.shape_cast %110 : vector<2xf32> to vector<2x1xf32>
    %112 = arith.addf %106, %111 : vector<2x1xf32>
    %c288 = arith.constant 288 : index
    %c0_52 = arith.constant 0 : index
    %113 = vector.load %arg7[%c288, %c0_52] : memref<376x128xf32, #tpu.memory_space<vmem>>, vector<1x32xf32>
    %114 = vector.broadcast %113 : vector<1x32xf32> to vector<2x32xf32>
    %115 = arith.mulf %12, %114 : vector<2x32xf32>
    %cst_53 = arith.constant dense<0.000000e+00> : vector<2xf32>
    %116 = vector.multi_reduction <add>, %115, %cst_53 [1] : vector<2x32xf32> to vector<2xf32>
    %117 = vector.shape_cast %116 : vector<2xf32> to vector<2x1xf32>
    %118 = arith.addf %112, %117 : vector<2x1xf32>
    %c296 = arith.constant 296 : index
    %c0_54 = arith.constant 0 : index
    %119 = vector.load %arg7[%c296, %c0_54] : memref<376x128xf32, #tpu.memory_space<vmem>>, vector<1x1xf32>
    %120 = vector.broadcast %119 : vector<1x1xf32> to vector<2x1xf32>
    %121 = arith.addf %118, %120 : vector<2x1xf32>
    %cst_55 = arith.constant 5.000000e-01 : f32
    %122 = vector.broadcast %cst_55 : f32 to vector<2x1xf32>
    %123 = arith.mulf %122, %121 : vector<2x1xf32>
    %124 = math.tanh %123 : vector<2x1xf32>
    %cst_56 = arith.constant 1.000000e+00 : f32
    %125 = vector.broadcast %cst_56 : f32 to vector<2x1xf32>
    %126 = arith.addf %124, %125 : vector<2x1xf32>
    %cst_57 = arith.constant 5.000000e-01 : f32
    %127 = vector.broadcast %cst_57 : f32 to vector<2x1xf32>
    %128 = arith.mulf %127, %126 : vector<2x1xf32>
    %c304 = arith.constant 304 : index
    %c0_58 = arith.constant 0 : index
    %129 = vector.load %arg7[%c304, %c0_58] : memref<376x128xf32, #tpu.memory_space<vmem>>, vector<16x16xf32>
    %cst_59 = arith.constant dense<0.000000e+00> : vector<2x16xf32>
    %130 = tpu.matmul %51, %129, %cst_59 {dimension_numbers = #tpu.dot_dimension_numbers<[1], [0], [0], [1], [0, 0, 1, 1], [], []>} : vector<2x16xf32>, vector<16x16xf32>, vector<2x16xf32> -> vector<2x16xf32>
    %c320 = arith.constant 320 : index
    %c0_60 = arith.constant 0 : index
    %131 = vector.load %arg7[%c320, %c0_60] : memref<376x128xf32, #tpu.memory_space<vmem>>, vector<32x16xf32>
    %cst_61 = arith.constant dense<0.000000e+00> : vector<2x16xf32>
    %132 = tpu.matmul %88, %131, %cst_61 {dimension_numbers = #tpu.dot_dimension_numbers<[1], [0], [0], [1], [0, 0, 1, 1], [], []>} : vector<2x32xf32>, vector<32x16xf32>, vector<2x16xf32> -> vector<2x16xf32>
    %133 = arith.addf %130, %132 : vector<2x16xf32>
    %c352 = arith.constant 352 : index
    %c0_62 = arith.constant 0 : index
    %134 = vector.load %arg7[%c352, %c0_62] : memref<376x128xf32, #tpu.memory_space<vmem>>, vector<16x16xf32>
    %cst_63 = arith.constant dense<0.000000e+00> : vector<2x16xf32>
    %135 = tpu.matmul %89, %134, %cst_63 {dimension_numbers = #tpu.dot_dimension_numbers<[1], [0], [0], [1], [0, 0, 1, 1], [], []>} : vector<2x16xf32>, vector<16x16xf32>, vector<2x16xf32> -> vector<2x16xf32>
    %136 = arith.addf %133, %135 : vector<2x16xf32>
    %c368 = arith.constant 368 : index
    %c0_64 = arith.constant 0 : index
    %137 = vector.load %arg7[%c368, %c0_64] : memref<376x128xf32, #tpu.memory_space<vmem>>, vector<1x16xf32>
    %138 = vector.broadcast %137 : vector<1x16xf32> to vector<2x16xf32>
    %139 = arith.addf %136, %138 : vector<2x16xf32>
    %c0_65 = arith.constant 0 : index
    %c0_66 = arith.constant 0 : index
    %140 = vector.load %arg8[%c0_65, %c0_66] : memref<24x72xf32, #tpu.memory_space<vmem>>, vector<16x72xf32>
    %cst_67 = arith.constant dense<0.000000e+00> : vector<2x72xf32>
    %141 = tpu.matmul %139, %140, %cst_67 {dimension_numbers = #tpu.dot_dimension_numbers<[1], [0], [0], [1], [0, 0, 1, 1], [], []>} : vector<2x16xf32>, vector<16x72xf32>, vector<2x72xf32> -> vector<2x72xf32>
    %c16 = arith.constant 16 : index
    %c0_68 = arith.constant 0 : index
    %142 = vector.load %arg8[%c16, %c0_68] : memref<24x72xf32, #tpu.memory_space<vmem>>, vector<1x72xf32>
    %143 = vector.broadcast %142 : vector<1x72xf32> to vector<2x72xf32>
    %144 = arith.addf %141, %143 : vector<2x72xf32>
    %cst_69 = arith.constant dense<0xFF800000> : vector<2xf32>
    %145 = vector.multi_reduction <maximumf>, %144, %cst_69 [1] : vector<2x72xf32> to vector<2xf32>
    %146 = vector.shape_cast %145 : vector<2xf32> to vector<2x1xf32>
    %147 = vector.broadcast %146 : vector<2x1xf32> to vector<2x72xf32>
    %148 = arith.subf %144, %147 : vector<2x72xf32>
    %149 = math.exp %148 : vector<2x72xf32>
    %cst_70 = arith.constant dense<0.000000e+00> : vector<2xf32>
    %150 = vector.multi_reduction <add>, %149, %cst_70 [1] : vector<2x72xf32> to vector<2xf32>
    %151 = vector.shape_cast %150 : vector<2xf32> to vector<2x1xf32>
    %152 = tpu.reciprocal %151 : vector<2x1xf32> -> vector<2x1xf32>
    %153 = vector.broadcast %152 : vector<2x1xf32> to vector<2x72xf32>
    %154 = arith.mulf %149, %153 : vector<2x72xf32>
    %155 = vector.broadcast %128 : vector<2x1xf32> to vector<2x72xf32>
    %156 = arith.mulf %155, %154 : vector<2x72xf32>
    %cst_71 = arith.constant 1.000000e+00 : f32
    %157 = vector.broadcast %cst_71 : f32 to vector<2x1xf32>
    %158 = arith.subf %157, %128 : vector<2x1xf32>
    %159 = vector.broadcast %158 : vector<2x1xf32> to vector<2x8xf32>
    %160 = arith.mulf %159, %84 : vector<2x8xf32>
    %161 = tpu.iota {dimensions = array<i32: 2>} : vector<2x8x72xi32>
    %c0_72 = arith.constant 0 : index
    %c0_73 = arith.constant 0 : index
    %162 = vector.load %arg6[%c0_72, %c0_73] : memref<2x8xi32, #tpu.memory_space<vmem>>, vector<2x8xi32>
    %163 = vector.shape_cast %162 : vector<2x8xi32> to vector<2x8x1xi32>
    %164 = vector.broadcast %163 : vector<2x8x1xi32> to vector<2x8x72xi32>
    %165 = arith.cmpi eq, %161, %164 : vector<2x8x72xi32>
    %166 = arith.extui %165 : vector<2x8x72xi1> to vector<2x8x72xi32>
    %167 = arith.sitofp %166 : vector<2x8x72xi32> to vector<2x8x72xf32>
    %168 = vector.shape_cast %160 : vector<2x8xf32> to vector<2x8x1xf32>
    %169 = vector.broadcast %168 : vector<2x8x1xf32> to vector<2x8x72xf32>
    %170 = arith.mulf %169, %167 : vector<2x8x72xf32>
    %cst_74 = arith.constant dense<0.000000e+00> : vector<2x72xf32>
    %171 = vector.multi_reduction <add>, %170, %cst_74 [1] : vector<2x8x72xf32> to vector<2x72xf32>
    %172 = arith.addf %156, %171 : vector<2x72xf32>
    %cst_75 = arith.constant 0.000000e+00 : f32
    %173 = vector.broadcast %cst_75 : f32 to vector<2x112xf32>
    %174 = tpu.concatenate %172, %51, %49, %88, %75, %173 in 1 : vector<2x72xf32>, vector<2x16xf32>, vector<2x16xf32>, vector<2x32xf32>, vector<2x8xf32>, vector<2x112xf32> -> vector<2x256xf32>
    %c0_76 = arith.constant 0 : index
    %c0_77 = arith.constant 0 : index
    %175 = vector.load %arg9[%c0_76, %c0_77] : memref<2x256xf32, #tpu.memory_space<vmem>>, vector<2x256xf32>
    tpu.vector_store %arg9[%c0_76, %c0_77], %174 {strides = array<i32>} : memref<2x256xf32, #tpu.memory_space<vmem>>, vector<2x256xf32>,
    return
  }
}

</mosaic_0001>

<bundles_post_ra>
// kernel: tpu_custom_call.1
= control target key start
LH: loop header
LB: loop body
LE: loop exit
PB: predicated region body
PF: predicated region fallthrough
CT: control target
= control target key end

     0   :  { %14 = vsyncpa [#allocation3], 0  ;;  %s2082_s0 = inlined_call_operand.hbm [shape: f32[2,32], index: 0, kind: input, shape index: {}]   ;;  %s2083_s1 = inlined_call_operand.vmem [shape: f32[2,32], index: 1, kind: input, shape index: {}]   ;;  %s2084_s2 = inlined_call_operand.vmem [shape: f32[2,16], index: 2, kind: input, shape index: {}]   ;;  %s2085_s3 = inlined_call_operand.vmem [shape: f32[2,16], index: 3, kind: input, shape index: {}]   ;;  %s2086_s4 = inlined_call_operand.hbm [shape: f32[16,32], index: 4, kind: input, shape index: {}]   ;;  %s2087_s5 = inlined_call_operand.hbm [shape: f32[2,8], index: 5, kind: input, shape index: {}]   ;;  %s2088_s6 = inlined_call_operand.hbm [shape: s32[2,8], index: 6, kind: input, shape index: {}]   ;;  %s2089_s7 = inlined_call_operand.hbm [shape: f32[376,128], index: 7, kind: input, shape index: {}]   ;;  %s2090_s8 = inlined_call_operand.vmem [shape: f32[24,72], index: 8, kind: input, shape index: {}]   ;;  %s2091_s9 = inlined_call_operand.hbm [shape: f32[2,256], index: 9, kind: output, shape index: {}]  }
   0x1   :  { %15 = vsyncpa [#allocation6], 0 }
   0x2   :  { %16 = vsyncpa [#allocation9], 0 }
   0x3   :  { %17 = vsyncpa [#allocation4], 0  ;;  %s1784_s30 = smov [#allocation5]   ;;  %s1644_s13 = scalar_lea.hbm %s2086_s4, 256 }
   0x4   :  { %s39_s10 = sshll.u32 %s1784_s30, 4  ;;  %p1645_p0 = scmp.ne.s32.totalorder %s2086_s4, %s1644_s13  ;;  %s40_s10 = int_to_ptr.vmem [resolvable:$true] %s39_s10 }
   0x5   :  { %p1648_p1 = scmp.lt.u32.totalorder %s1644_s13, %s2086_s4 }
   0x7   :  { %p1650_p2 = pnand %p1648_p1, %p1645_p0 }
   0x9   :  { %1653 = shalt.err (!%p1650_p2)
}
   0xa   :  { %s1654_s18 = scalar_lea.vmem %s40_s10, 256  ;;  %p1659_p4 = scmp.lt.s32.totalorder %s40_s10, %s40_s10 }
   0xb   :  { %p1655_p3 = scmp.ne.s32.totalorder %s40_s10, %s1654_s18  ;;  %p1660_p5 = scmp.lt.s32.totalorder %s1654_s18, %s1654_s18 }
   0xd   :  { %p1661_p6 = por %p1660_p5, %p1659_p4 }
   0xf   :  { %p1662_p7 = pnand %p1661_p6, %p1655_p3 }
  0x11   :  { %1665 = shalt.err (!%p1662_p7)
}
  0x12   :  { %s1785_s19 = smov 128   ;;  %s1786_s20 = smov 8  }
  0x13   :  { %45 = dma.hbm_to_vmem [thread:$0]  %s2086_s4, 256, %s40_s10, [#allocation6], %s1785_s19, %s1785_s19, %s1786_s20  }
  0x14   :  { %s1787_s23 = smov [#allocation8]   ;;  %s1788_s25 = smov [#allocation2]  }
  0x15   :  { %s62_s24 = sshll.u32 %s1787_s23, 4  ;;  %s24_s26 = sshll.u32 %s1788_s25, 4  ;;  %s63_s24 = int_to_ptr.vmem [resolvable:$true] %s62_s24  ;;  %s25_s26 = int_to_ptr.vmem [resolvable:$true] %s24_s26 }
  0x16   :  { %s1666_s29 = scalar_lea.hbm %s2088_s6, 32 }
  0x17   :  { %p1667_p8 = scmp.ne.s32.totalorder %s2088_s6, %s1666_s29  ;;  %p1670_p9 = scmp.lt.u32.totalorder %s1666_s29, %s2088_s6 }
  0x19   :  { %p1672_p10 = pnand %p1670_p9, %p1667_p8 }
  0x1b   :  { %1675 = shalt.err (!%p1672_p10)
}
  0x1c   :  { %s1676_s4 = scalar_lea.vmem %s63_s24, 32  ;;  %p1681_p12 = scmp.lt.s32.totalorder %s63_s24, %s63_s24 }
  0x1d   :  { %p1677_p11 = scmp.ne.s32.totalorder %s63_s24, %s1676_s4  ;;  %p1682_p13 = scmp.lt.s32.totalorder %s1676_s4, %s1676_s4 }
  0x1f   :  { %p1683_p0 = por %p1682_p13, %p1681_p12 }
  0x21   :  { %p1684_p1 = pnand %p1683_p0, %p1677_p11 }
  0x23   :  { %1687 = shalt.err (!%p1684_p1)
}
  0x24   :  { %65 = dma.hbm_to_vmem [thread:$0]  %s2088_s6, 32, %s63_s24, [#allocation9]  }
  0x25   :  { %s1688_s17 = scalar_lea.hbm %s2082_s0, 32 }
  0x26   :  { %p1689_p2 = scmp.ne.s32.totalorder %s2082_s0, %s1688_s17  ;;  %p1692_p3 = scmp.lt.u32.totalorder %s1688_s17, %s2082_s0 }
  0x28   :  { %p1694_p4 = pnand %p1692_p3, %p1689_p2 }
  0x2a   :  { %1697 = shalt.err (!%p1694_p4)
}
  0x2b   :  { %s1698_s25 = scalar_lea.vmem %s25_s26, 32  ;;  %p1703_p6 = scmp.lt.s32.totalorder %s25_s26, %s25_s26 }
  0x2c   :  { %p1699_p5 = scmp.ne.s32.totalorder %s25_s26, %s1698_s25  ;;  %p1704_p7 = scmp.lt.s32.totalorder %s1698_s25, %s1698_s25 }
  0x2e   :  { %p1705_p8 = por %p1704_p7, %p1703_p6 }
  0x30   :  { %p1706_p9 = pnand %p1705_p8, %p1699_p5 }
  0x32   :  { %1709 = shalt.err (!%p1706_p9)
}
  0x33   :  { %27 = dma.hbm_to_vmem [thread:$0]  %s2082_s0, 32, %s25_s26, [#allocation3]  }
  0x34   :  { %s1789_s27 = smov [#allocation7]   ;;  %s1790_s29 = smov [#allocation10]  }
  0x35   :  { %s52_s28 = sshll.u32 %s1789_s27, 4  ;;  %s71_s30 = sshll.u32 %s1790_s29, 4  ;;  %s53_s28 = int_to_ptr.vmem [resolvable:$true] %s52_s28  ;;  %s72_s30 = int_to_ptr.vmem [resolvable:$true] %s71_s30 }
  0x36   :  { %s1710_s13 = scalar_lea.hbm %s2087_s5, 32 }
  0x37   :  { %p1711_p10 = scmp.ne.s32.totalorder %s2087_s5, %s1710_s13  ;;  %p1714_p11 = scmp.lt.u32.totalorder %s1710_s13, %s2087_s5 }
  0x39   :  { %p1716_p12 = pnand %p1714_p11, %p1711_p10 }
  0x3b   :  { %1719 = shalt.err (!%p1716_p12)
}
  0x3c   :  { %s1720_s0 = scalar_lea.vmem %s53_s28, 32  ;;  %p1725_p0 = scmp.lt.s32.totalorder %s53_s28, %s53_s28 }
  0x3d   :  { %p1721_p13 = scmp.ne.s32.totalorder %s53_s28, %s1720_s0  ;;  %p1726_p1 = scmp.lt.s32.totalorder %s1720_s0, %s1720_s0 }
  0x3f   :  { %p1727_p2 = por %p1726_p1, %p1725_p0 }
  0x41   :  { %p1728_p3 = pnand %p1727_p2, %p1721_p13 }
  0x43   :  { %1731 = shalt.err (!%p1728_p3)
}
  0x44   :  { %55 = dma.hbm_to_vmem [thread:$0]  %s2087_s5, 32, %s53_s28, [#allocation6]  }
  0x45   :  { %s1732_s21 = scalar_lea.hbm %s2089_s7, 6016 }
  0x46   :  { %p1733_p4 = scmp.ne.s32.totalorder %s2089_s7, %s1732_s21  ;;  %p1736_p5 = scmp.lt.u32.totalorder %s1732_s21, %s2089_s7 }
  0x48   :  { %p1738_p6 = pnand %p1736_p5, %p1733_p4 }
  0x4a   :  { %1741 = shalt.err (!%p1738_p6)
}
  0x4b   :  { %s1742_s24 = scalar_lea.vmem %s72_s30, 6016  ;;  %p1747_p8 = scmp.lt.s32.totalorder %s72_s30, %s72_s30 }
  0x4c   :  { %p1743_p7 = scmp.ne.s32.totalorder %s72_s30, %s1742_s24  ;;  %p1748_p9 = scmp.lt.s32.totalorder %s1742_s24, %s1742_s24 }
  0x4e   :  { %p1749_p10 = por %p1748_p9, %p1747_p8 }
  0x50   :  { %p1750_p11 = pnand %p1749_p10, %p1743_p7 }
  0x52   :  { %1753 = shalt.err (!%p1750_p11)
}
  0x53   :  { %77 = dma.hbm_to_vmem [thread:$0]  %s2089_s7, 6016, %s72_s30, [#allocation9], %s1785_s19, %s1785_s19, %s1786_s20  }
  0x54   :  { %1776 = dma.done.wait [#allocation3], 32  }
  0x55   :  { %1777 = vsyncadd [#allocation3], 4294967264 }
  0x56   :  { %1778 = dma.done.wait [#allocation6], 288  }
  0x57   :  { %1779 = vsyncadd [#allocation6], 4294967008 }
  0x58   :  { %1780 = dma.done.wait [#allocation9], 6048  }
  0x59   :  { %1781 = vsyncadd [#allocation9], 4294961248  ;;  %v1791_v0 = vmov 0.0|0.0   ;;  %vm1792_vm0 = vmmov 0   ;;  %v1793_v1 = vmov 0.0   ;;  %v105_v2 = vld [vmem:[#allocation10 + $0x20] sm:$0xff] }
  0x5a   :  { %1548 = vmatprep.subr.bf16.mxu0 %v1791_v0  ;;  %1554 = vmatprep.subr.bf16.mxu1 %v1791_v0  ;;  %v106_v3 = vld [vmem:[#allocation10 + $0x28] sm:$0xff]  ;;  %v101_v4 = vld [vmem:[#allocation10] sm:$0xff]  ;;  %v107_v7 = vld [vmem:[#allocation10 + $0x30] sm:$0xff]  ;;  %vm109_vm1 = vcmask 261120   ;;  %vm268_vm2 = vcmask 130048   ;;  %s1795_s30 = smov 16  }
  0x5b   :  { %1459 = vmatprep.mubr.msk.f32.mxu0 %vm1792_vm0, %v1793_v1  ;;  %1470 = vmatprep.mubr.msk.f32.mxu1 %vm1792_vm0, %v1793_v1  ;;  %v1549_v5 = vpack.c.bf16 %v106_v3, %v105_v2  ;;  %v102_v6 = vld [vmem:[#allocation10 + $0x8] sm:$0xff]  ;;  %v108_v8 = vld [vmem:[#allocation10 + $0x38] sm:$0xff]  ;;  %v103_v10 = vld [vmem:[#allocation10 + $0x10] sm:$0xff]  ;;  %s1797_s11 = smov 32   ;;  %s1798_s12 = smov 80   ;;  %vm786_vm3 = vcmask 1041409  }
  0x5c   :  { %v1555_v9 = vpack.c.bf16 %v102_v6, %v101_v4  ;;  %v104_v11 = vld [vmem:[#allocation10 + $0x18] sm:$0xff]  ;;  %v1552_v12 = vpack.c.bf16 %v108_v8, %v107_v7  ;;  %v262_v14 = vld [vmem:[#allocation10 + $0x48] sm:$0xff]  ;;  %v263_v15 = vld [vmem:[#allocation10 + $0x50] sm:$0xff]  ;;  %vm789_vm4 = vcmask 58368   ;;  %s1801_s13 = smov 48   ;;  %vm846_vm5 = vcmask 254976  }
  0x5d   :  { %1550 = vmatpush3.bf16.msra.mxu0 %v1549_v5  ;;  %v1558_v13 = vpack.c.bf16 %v104_v11, %v103_v10  ;;  %v96_v16 = vld [vmem:[%s2083_s1] sm:$0x3]  ;;  %v95_v17 = vld [vmem:[#allocation2] sm:$0x3]  ;;  %v1564_v18 = vpack.c.bf16 %v263_v15, %v262_v14  ;;  %v264_v22 = vld [vmem:[#allocation10 + $0x58] sm:$0xff]  ;;  %vm874_vm6 = vcmask 123904  }
  0x5e   :  { %1556 = vmatpush3.bf16.msra.mxu1 %v1555_v9  ;;  %1551 = vmatprep.subr.bf16.mxu0 %v1791_v0  ;;  %v266_v19 = vld [vmem:[#allocation10 + $0x68] sm:$0xff]  ;;  %v267_v20 = vld [vmem:[#allocation10 + $0x70] sm:$0xff]  ;;  %v265_v23 = vld [vmem:[#allocation10 + $0x60] sm:$0xff]  ;;  %vm1230_vm7 = vcmask 582656   ;;  %s1803_s16 = smov 104   ;;  %s1804_s17 = smov 72  }
  0x5f   :  { %1557 = vmatprep.subr.bf16.mxu1 %v1791_v0  ;;  %v1561_v21 = vpack.c.bf16 %v267_v20, %v266_v19  ;;  %v1567_v24 = vpack.c.bf16 %v265_v23, %v264_v22  ;;  %v97_v25 = vld [vmem:[%s2084_s2] sm:$0x3]  ;;  %v1383_v28 = vld [vmem:[#allocation10 + $0x40] ss:$0 sm:$0xff]  ;;  %v1386_v36 = vld [vmem:[#allocation10 + $0x78] ss:$0 sm:$0xff] }
  0x60   :  { %s1794_s2 = smov 96   ;;  %v98_v41 = vld [vmem:[%s2085_s3] sm:$0x3]  ;;  %v535_v49 = vld [vmem:[#allocation10 + $0xb8] sm:$0xff]  ;;  %s1796_s3 = smov 112   ;;  %v447_v55 = vld [vmem:[#allocation10 + $0x80] sm:$0xff] }
  0x61   :  { %1553 = vmatpush3.bf16.msra.mxu0 %v1552_v12  ;;  %v534_v48 = vld [vmem:[#allocation10 + $0xb0] sm:$0xff]  ;;  %v448_v56 = vld [vmem:[#allocation10 + $0x88] sm:$0xff]  ;;  %v450_v59 = vld [vmem:[#allocation10 + $0x98] sm:$0xff]  ;;  %vm1302_vm10 = vcmask 588800   ;;  %vm1349_vm11 = vcmask 64512   ;;  %vm1345_vm12 = vcmask 719872  }
  0x62   :  { %1559 = vmatpush3.bf16.msra.mxu1 %v1558_v13  ;;  %1560 = vmatprep.subr.bf16.mxu0 %v1791_v0  ;;  %v1578_v50 = vpack.c.bf16 %v535_v49, %v534_v48  ;;  %v449_v57 = vld [vmem:[#allocation10 + $0x90] sm:$0xff]  ;;  %v1569_v58 = vpack.c.bf16 %v448_v56, %v447_v55  ;;  %v532_v62 = vld [vmem:[#allocation10 + $0xa0] sm:$0xff]  ;;  %v533_v63 = vld [vmem:[#allocation10 + $0xa8] sm:$0xff]  ;;  %vm1347_vm13 = vcmask 850944   ;;  %s1805_s18 = smov [#allocation11]  }
  0x63   :  { %1563 = vmatprep.subr.bf16.mxu1 %v1791_v0  ;;  %v1964_v60 = vld [vmem:[#allocation5] sm:$0xff]  ;;  %v1573_v61 = vpack.c.bf16 %v450_v59, %v449_v57  ;;  %v1968_v2 = vld [vmem:[#allocation5 + $0x8] sm:$0xff]  ;;  %v1581_v3 = vpack.c.bf16 %v533_v63, %v532_v62  ;;  %v1391_v22 = vld [vmem:[#allocation10 + $0xc0] ss:$0 sm:$0xff]  ;;  %s1370_s21 = sshll.u32 %s1805_s18, 4  ;;  %s1371_s21 = int_to_ptr.vmem [resolvable:$true] %s1370_s21 }
  0x64   :  { %1460 = vmatmul.mubr.msk.f32.vlgmr.msra.gmra.mrb[0].mxu0 %vm109_vm1, %v96_v16  ;;  %v917_v10 = vld [vmem:[#allocation10 + $0x130] sm:$0xff]  ;;  %v918_v11 = vld [vmem:[#allocation10 + $0x138] sm:$0xff]  ;;  %v1799_v16 = vmov 1966171168   ;;  %s1754_s22 = scalar_lea.vmem %s1371_s21, 64  ;;  %p1759_p13 = scmp.lt.s32.totalorder %s1371_s21, %s1371_s21 }
  0x65   :  { %1471 = vmatmul.mubr.msk.f32.vlgmr.msra.gmra.mrb[0].mxu1 %vm109_vm1, %v95_v17  ;;  %1477 = vmatprep.mubr.msk.f32.mxu0 %vm1792_vm0, %v1793_v1  ;;  %v1590_v12 = vpack.c.bf16 %v918_v11, %v917_v10  ;;  %v694_v17 = vunpack.c.l.s4 %v1799_v16  ;;  %p1755_p12 = scmp.ne.s32.totalorder %s1371_s21, %s1754_s22  ;;  %p1760_p0 = scmp.lt.s32.totalorder %s1754_s22, %s1754_s22 }
  0x66   :  { %1565 = vmatpush3.bf16.msra.mxu1 %v1564_v18  ;;  %1488 = vmatprep.mubr.msk.f32.mxu1 %vm1792_vm0, %v1793_v1  ;;  %v696_v18 = vlaneseq }
  0x67   :  { %1566 = vmatprep.subr.bf16.mxu1 %v1791_v0  ;;  %1562 = vmatpush3.bf16.msra.mxu0 %v1561_v21  ;;  %v695_v19 = vunpack.c.0.s8 %v694_v17  ;;  %p1761_p1 = por %p1760_p0, %p1759_p13 }
  0x68   :  { %1570 = vmatprep.subr.bf16.mxu0 %v1569_v58  ;;  %v697_v20 = vshrl.u32 %v696_v18, 7  ;;  %v2002_v56 = vand.u32 127, %v696_v18 }
  0x69   :  { %p1762_p2 = pnand %p1761_p1, %p1755_p12 }
  0x6a   :  { %1568 = vmatpush3.bf16.msra.mxu1 %v1567_v24  ;;  %1478 = vmatmul.mubr.msk.f32.vlgmr.msra.gmra.mrb[2].mxu0 %vm268_vm2, %v97_v25  ;;  %v698_v24 = vsub.s32 %v695_v19, %v697_v20  ;;  %v1333_v57 = vadd.s32 4294967288, %v2002_v56  ;;  %v780_v11 = vsub.s32 %v2002_v56, %v697_v20 }
  0x6b   :  { %1577 = vmatprep.subr.bf16.mxu1 %v1791_v0  ;;  %1499 = vmatprep.mubr.msk.f32.mxu0 %vm109_vm1, %v1964_v60 }
  0x6c   :  { %1572 = vmatpush3.bf16.msra.mxu0 %v1569_v58 }
  0x6d   :  { %1574 = vmatprep.subr.bf16.mxu0 %v1573_v61 }
  0x70   :  { %1576 = vmatpush3.bf16.msra.mxu0 %v1573_v61 }
  0x71   :  { %1580 = vmatprep.subr.bf16.mxu0 %v1791_v0 }
  0x73   :  { %1500 = vmatmul.mubr.msk.f32.vlgmr.msra.gmra.mrb[4].mxu0 %vm109_vm1, %v1968_v2 }
  0x74   :  { %1582 = vmatpush3.bf16.msra.mxu0 %v1581_v3  ;;  %1513 = vmatprep.mubr.msk.f32.mxu0 %vm1792_vm0, %v1793_v1  ;;  %v1336_v3 = vsub.s32 %v1333_v57, %v697_v20 }
  0x75   :  { %1589 = vmatprep.subr.bf16.mxu0 %v1791_v0 }
 0x137   :  { %v179_v26 = vpop.f32.mrb[0].mxu0 }
 0x138   :  { %v252_v27 = vpop.f32.mrb[0].mxu1  ;;  %v1461_v29 = vpop.f32.mrb[1].mxu0 }
 0x139   :  { %v253_v30 = vadd.f32 %v252_v27, %v179_v26  ;;  %v1472_v31 = vpop.f32.mrb[1].mxu1  ;;  %v1992_v29 = vsub.s32 0, %v697_v20 }
 0x13b   :  { %v1947_v32 = vadd.f32 %v1383_v28, %v253_v30 }
 0x13d   :  { %1489 = vmatmul.mubr.msk.f32.vlgmr.msra.gmra.mrb[2].mxu1 %vm109_vm1, %v1947_v32  ;;  %v338_v33 = vpop.f32.mrb[2].mxu0 }
 0x13e   :  { %1506 = vmatprep.mubr.msk.f32.mxu1 %vm1792_vm0, %v1793_v1  ;;  %v1479_v34 = vpop.f32.mrb[3].mxu0  ;;  %1579 = vmatpush3.bf16.msra.mxu1 %v1578_v50  ;;  %v1800_v50 = vmov 0  }
 0x13f   :  { %1583 = vmatprep.subr.bf16.mxu1 %v1791_v0  ;;  %1620 = vset.pattern.permute.xlu0 %v1800_v50 }
 0x140   :  { %1621 = vset.pattern.permute.xlu1 %v1800_v50 }
 0x146   :  { %v1501_v8 = vpop.f32.mrb[4].mxu0 }
 0x147   :  { %v523_v9 = vpop.f32.mrb[5].mxu0 }
 0x210   :  { %v411_v35 = vpop.f32.mrb[2].mxu1 }
 0x211   :  { %v412_v37 = vadd.f32 %v411_v35, %v338_v33  ;;  %v1490_v38 = vpop.f32.mrb[3].mxu1 }
 0x213   :  { %v420_v39 = vadd.f32 %v1386_v36, %v412_v37 }
 0x215   :  { %1622 = vtanh.f32 %v420_v39  ;;  %v421_v42 = vmul.f32 0.5, %v420_v39  ;;  %v1392_v39 = vld [vmem:[#allocation10 + $0xc8] ss:$0 sm:$0xff] }
 0x217   :  { %1624 = vtanh.f32 %v421_v42 }
 0x21f   :  { %v1623_v40 = vpop.eup %1622 }
 0x220   :  { %432 = vrot.lane.b32.xlu0 %v1623_v40, %s1794_s2 }
 0x221   :  { %v1625_v43 = vpop.eup %1624 }
 0x222   :  { %v423_v44 = vadd.f32 1.0, %v1625_v43 }
 0x224   :  { %427 = vrot.lane.b32.xlu0 %v98_v41, %s1795_s30  ;;  %v424_v45 = vmul.f32 0.5, %v423_v44 }
 0x292   :  { %v433_v46 = vpop.permute.xlu0 %432 }
 0x293   :  { %v435_v47 = vmul.f32 %v433_v46, %v424_v45  ;;  %v1998_v46 = vsub.s32 1, %v697_v20 }
 0x295   :  { %437 = vrot.lane.b32.xlu1 %v435_v47, %s1795_s30  ;;  %v748_v47 = vld [vmem:[#allocation7] sm:$0x3] }
 0x296   :  { %v428_v51 = vpop.permute.xlu0 %427  ;;  %v760_v48 = vrot.slane %v748_v47, %v1998_v46  ;;  %v753_v49 = vrot.slane %v748_v47, %v1992_v29 }
 0x297   :  { %v430_v52 = vmul.f32 %v428_v51, %v424_v45 }
 0x307   :  { %v438_v53 = vpop.permute.xlu1 %437 }
 0x308   :  { %v1959_v54 = vadd.f32 %v438_v53, %v430_v52 }
 0x30a   :  { %1626 = vtanh.f32 %v1959_v54  ;;  %537 = vrot.lane.b32.xlu0 %v1959_v54, %s1796_s3 }
 0x314   :  { %v1627_v4 = vpop.eup %1626 }
 0x315   :  { %443 = vrot.lane.b32.xlu1 %v1627_v4, %s1797_s11 }
 0x37c   :  { %v538_v5 = vpop.permute.xlu0 %537 }
 0x37d   :  { %1507 = vmatmul.mubr.msk.f32.vlgmr.msra.gmra.mrb[4].mxu1 %vm268_vm2, %v538_v5 }
 0x37e   :  { %1524 = vmatprep.mubr.msk.f32.mxu1 %vm1792_vm0, %v1793_v1 }
 0x387   :  { %v444_v6 = vpop.permute.xlu1 %443 }
 0x388   :  { %v1979_v7 = vmul.f32 %v444_v6, %v424_v45 }
 0x38a   :  { %612 = vrot.lane.b32.xlu1 %v1979_v7, %s1798_s12 }
 0x3fc   :  { %v613_v13 = vpop.permute.xlu1 %612 }
 0x3fd   :  { %1514 = vmatmul.mubr.msk.f32.vlgmr.msra.gmra.mrb[6].mxu0 %vm268_vm2, %v613_v13 }
 0x3fe   :  { %1591 = vmatpush3.bf16.msra.mxu0 %v1590_v12  ;;  %1531 = vmatprep.mubr.msk.f32.mxu0 %vm1792_vm0, %v1793_v1 }
 0x3ff   :  { %1592 = vmatprep.subr.bf16.mxu0 %v1791_v0 }
 0x401   :  { %1532 = vmatmul.mubr.msk.f32.vlgmr.msra.gmra.mrb[8].mxu0 %vm268_vm2, %v613_v13 }
 0x402   :  { %1538 = vmatprep.mubr.msk.f32.mxu0 %vm1792_vm0, %v1793_v1 }
 0x450   :  { %v607_v14 = vpop.f32.mrb[4].mxu1 }
 0x451   :  { %v1508_v15 = vpop.f32.mrb[5].mxu1 }
 0x4d0   :  { %v682_v21 = vpop.f32.mrb[6].mxu0 }
 0x4d1   :  { %v683_v23 = vadd.f32 %v682_v21, %v607_v14  ;;  %v1515_v25 = vpop.f32.mrb[7].mxu0 }
 0x4d2   :  { %v1395_v25 = vld [vmem:[#allocation10 + $0x110] ss:$0 sm:$0xff] }
 0x4d3   :  { %v691_v26 = vadd.f32 %v1391_v22, %v683_v23 }
 0x4d4   :  { %v1990_v27 = vpop.f32.mrb[8].mxu0 }
 0x4d5   :  { %v699_v28 = vrot.slane %v691_v26, %v698_v24  ;;  %v1533_v30 = vpop.f32.mrb[9].mxu0  ;;  %v1396_v26 = vld [vmem:[#allocation10 + $0x118] ss:$0 sm:$0xff] }
 0x4d6   :  { %v920_v30 = vld [vmem:[#allocation10 + $0x148] sm:$0xff] }
 0x4d7   :  { %v700_v31 = vcombine.high %v699_v28, %v699_v28  ;;  %v707_v33 = vrot.slane %v699_v28, %v698_v24  ;;  %v919_v28 = vld [vmem:[#allocation10 + $0x140] sm:$0xff] }
 0x4d9   :  { %v714_v34 = vrot.slane %v700_v31, %v698_v24  ;;  %v718_v35 = vrot.slane %v707_v33, %v1992_v29  ;;  %v1584_v31 = vpack.c.bf16 %v920_v30, %v919_v28  ;;  %v921_v33 = vld [vmem:[#allocation10 + $0x150] sm:$0xff] }
 0x4db   :  { %v722_v36 = vrot.slane %v714_v34, %v1992_v29  ;;  %v725_v37 = vadd.f32 %v718_v35, %v523_v9  ;;  %1585 = vmatpush3.bf16.msra.mxu1 %v1584_v31  ;;  %v922_v34 = vld [vmem:[#allocation10 + $0x158] sm:$0xff] }
 0x4dc   :  { %1586 = vmatprep.subr.bf16.mxu1 %v1791_v0  ;;  %v1587_v35 = vpack.c.bf16 %v922_v34, %v921_v33  ;;  %v1401_v34 = vld [vmem:[#allocation10 + $0x170] ss:$0 sm:$0xff] }
 0x4dd   :  { %v726_v38 = vadd.f32 %v1501_v8, %v722_v36  ;;  %1628 = vtanh.f32 %v725_v37  ;;  %v1068_v36 = vld [vmem:[#allocation10 + $0x160] sm:$0xff]  ;;  %v1069_v37 = vld [vmem:[#allocation10 + $0x168] sm:$0xff] }
 0x4df   :  { %1630 = vtanh.f32 %v726_v38  ;;  %v1593_v38 = vpack.c.bf16 %v1069_v37, %v1068_v36  ;;  %1588 = vmatpush3.bf16.msra.mxu1 %v1587_v35  ;;  %v1265_v37 = vld [vmem:[#allocation8] sm:$0x3] }
 0x4e0   :  { %1595 = vmatprep.subr.bf16.mxu1 %v1791_v0 }
 0x4e1   :  { %1594 = vmatpush3.bf16.msra.mxu0 %v1593_v38  ;;  %v1269_v38 = vrot.slane %v1265_v37, %v1992_v29 }
 0x4e4   :  { %1539 = vmatmul.mubr.f32.vlgmr.msra.gmra.mrb[10].mxu0 %v1793_v1 }
 0x4e7   :  { %v1629_v40 = vpop.eup %1628 }
 0x4e8   :  { %v734_v41 = vmul.f32 %v1629_v40, %v1392_v39 }
 0x4e9   :  { %v1631_v42 = vpop.eup %1630 }
 0x4ea   :  { %v736_v43 = vsel %vm109_vm1, %v734_v41, 0.0  ;;  %v735_v44 = vmul.f32 %v1631_v42, %v1392_v39  ;;  %v1394_v39 = vld [vmem:[#allocation10 + $0x108] ss:$0 sm:$0xff] }
 0x4eb   :  { %737 = vadd.xlane.f32.xlu0 %v736_v43  ;;  %v855_v40 = vmul.f32 0.0, %v1394_v39 }
 0x4ec   :  { %v739_v45 = vsel %vm109_vm1, %v735_v44, 0.0 }
 0x4ed   :  { %740 = vadd.xlane.f32.xlu1 %v739_v45  ;;  %v856_v41 = vsel %vm268_vm2, %v855_v40, 0.0 }
 0x4fe   :  { %762 = vbcast.lane.b32.xlu1 %v760_v48, 256 }
 0x501   :  { %755 = vbcast.lane.b32.xlu0 %v753_v49, 256 }
 0x578   :  { %v738_v51 = vpop.xlane.xlu0 %737 }
 0x579   :  { %v742_v52 = vmul.f32 1.442695, %v738_v51 }
 0x57a   :  { %v741_v53 = vpop.xlane.xlu1 %740 }
 0x57b   :  { %1632 = vpow2.f32 %v742_v52  ;;  %v744_v55 = vmul.f32 1.442695, %v741_v53 }
 0x57c   :  { %v756_v58 = vpop.permute.xlu0 %755 }
 0x57d   :  { %1634 = vpow2.f32 %v744_v55 }
 0x57e   :  { %v763_v61 = vpop.permute.xlu1 %762 }
 0x585   :  { %v1633_v59 = vpop.eup %1632 }
 0x586   :  { %v766_v62 = vmul.f32 %v1633_v59, %v756_v58  ;;  %v746_v63 = vadd.f32 1e-10, %v1633_v59 }
 0x587   :  { %v1635_v4 = vpop.eup %1634 }
 0x588   :  { %v767_v5 = vmul.f32 %v1635_v4, %v763_v61  ;;  %771 = vperm.xlu0 %1620, %v766_v62   ;;  %v747_v6 = vadd.f32 1e-10, %v1635_v4  ;;  %v1337_v8 = vrot.slane %v746_v63, %v1336_v3 }
 0x58a   :  { %774 = vperm.xlu1 %1621, %v767_v5   ;;  %v1341_v9 = vrot.slane %v747_v6, %v1336_v3 }
 0x58c   :  { %v2006_v10 = vsel %vm786_vm3, %v1341_v9, %v1337_v8  ;;  %v1393_v9 = vld [vmem:[#allocation10 + $0x100] ss:$0 sm:$0xff] }
 0x607   :  { %v772_v12 = vpop.permute.xlu0 %771 }
 0x608   :  { %v781_v14 = vrot.slane %v772_v12, %v780_v11 }
 0x609   :  { %v775_v13 = vpop.permute.xlu1 %774 }
 0x60a   :  { %v785_v15 = vrot.slane %v775_v13, %v780_v11 }
 0x60c   :  { %v787_v16 = vsel %vm786_vm3, %v785_v15, %v781_v14 }
 0x60d   :  { %v790_v17 = vsel %vm789_vm4, %v787_v16, 0.0  ;;  %v1139_v16 = vpop.f32.mrb[10].mxu0 }
 0x60e   :  { %791 = vadd.xlane.f32.xlu1 %v790_v17  ;;  %v1150_v17 = vld [vmem:[%s2090_s8] sm:$0xff] }
 0x612   :  { %857 = vadd.xlane.f32.xlu1 %v856_v41 }
 0x69b   :  { %v792_v18 = vpop.xlane.xlu1 %791 }
 0x69c   :  { %v793_v19 = vadd.f32 1e-10, %v792_v18  ;;  %v1151_v18 = vld [vmem:[%s2090_s8 + $0x8] sm:$0xff] }
 0x69e   :  { %1636 = vrcp.f32 %v793_v19  ;;  %v1540_v19 = vpop.f32.mrb[11].mxu0 }
 0x69f   :  { %v858_v39 = vpop.xlane.xlu1 %857 }
 0x6a8   :  { %v1637_v21 = vpop.eup %1636 }
 0x6a9   :  { %v799_v22 = vrot.slane %v1637_v21, %v1992_v29  ;;  %v803_v24 = vrot.slane %v1637_v21, %v1998_v46  ;;  %v1596_v21 = vpack.c.bf16 %v1151_v18, %v1150_v17 }
 0x6ab   :  { %v806_v23 = vmul.f32 %v799_v22, %v766_v62  ;;  %v807_v20 = vmul.f32 %v803_v24, %v767_v5  ;;  %v1397_v24 = vld [vmem:[#allocation10 + $0x120] ss:$0 sm:$0xff] }
 0x6ad   :  { %810 = vperm.xlu0 %1620, %v806_v23  }
 0x6b1   :  { %815 = vperm.xlu0 %1620, %v807_v20  }
 0x6b5   :  { %866 = vrot.lane.b32.xlu0 %v1395_v25, %s1801_s13 }
 0x6b9   :  { %885 = vrot.lane.b32.xlu0 %v1396_v26, %s1795_s30  ;;  %v902_v26 = vmul.f32 %v1397_v24, %v1947_v32 }
 0x6bb   :  { %v903_v28 = vsel %vm846_vm5, %v902_v26, 0.0 }
 0x72c   :  { %v811_v42 = vpop.permute.xlu0 %810 }
 0x72d   :  { %v818_v43 = vmul.f32 %v811_v42, %v1964_v60  ;;  %v1257_v48 = vrot.slane %v811_v42, %v780_v11 }
 0x72f   :  { %v820_v44 = vsel %vm109_vm1, %v818_v43, 0.0 }
 0x730   :  { %v821_v45 = vrot.slane %v820_v44, 4  ;;  %v816_v47 = vpop.permute.xlu0 %815 }
 0x731   :  { %v819_v49 = vmul.f32 %v816_v47, %v1968_v2  ;;  %v1261_v50 = vrot.slane %v816_v47, %v780_v11 }
 0x732   :  { %v822_v51 = vadd.f32 %v821_v45, %v820_v44 }
 0x733   :  { %v827_v0 = vsel %vm109_vm1, %v819_v49, 0.0  ;;  %v2022_v52 = vsel %vm786_vm3, %v1261_v50, %v1257_v48  ;;  %v1402_v50 = vld [vmem:[%s2090_s8 + $0x10] ss:$0 sm:$0xff]  ;;  %s1802_s8 = smov 24  }
 0x734   :  { %v823_v53 = vrot.slane %v822_v51, 2  ;;  %v828_v55 = vrot.slane %v827_v0, 4  ;;  %v867_v57 = vpop.permute.xlu0 %866 }
 0x735   :  { %v869_v58 = vmul.f32 %v867_v57, %v1979_v7 }
 0x736   :  { %v824_v60 = vadd.f32 %v823_v53, %v822_v51  ;;  %v829_v59 = vadd.f32 %v828_v55, %v827_v0 }
 0x737   :  { %871 = vrot.lane.b32.xlu0 %v869_v58, %s1798_s12 }
 0x738   :  { %v830_v61 = vrot.slane %v829_v59, 2  ;;  %v886_v62 = vpop.permute.xlu0 %885  ;;  %v825_v63 = vrot.slane %v824_v60, 1 }
 0x739   :  { %v888_v2 = vmul.f32 %v886_v62, %v1959_v54 }
 0x73a   :  { %v831_v3 = vadd.f32 %v830_v61, %v829_v59  ;;  %v826_v5 = vadd.f32 %v825_v63, %v824_v60  ;;  %v1276_v61 = vrot.slane %v1265_v37, %v1998_v46 }
 0x73b   :  { %890 = vrot.lane.b32.xlu0 %v888_v2, %s1796_s3 }
 0x73c   :  { %v832_v4 = vrot.slane %v831_v3, 1  ;;  %v839_v13 = vmul.f32 %v1393_v9, %v826_v5 }
 0x73e   :  { %v833_v6 = vadd.f32 %v832_v4, %v831_v3 }
 0x740   :  { %v2029_v8 = vsel %vm786_vm3, %v833_v6, %v826_v5  ;;  %v840_v11 = vmul.f32 %v1393_v9, %v833_v6 }
 0x741   :  { %1525 = vmatmul.mubr.msk.f32.vlgmr.msra.gmra.mrb[6].mxu1 %vm109_vm1, %v2029_v8 }
 0x742   :  { %1545 = vmatprep.mubr.msk.f32.mxu1 %vm1792_vm0, %v1793_v1  ;;  %v843_v12 = vrot.slane %v840_v11, 7  ;;  %1597 = vmatpush3.bf16.msra.mxu1 %v1596_v21 }
 0x744   :  { %v844_v14 = vsel %vm786_vm3, %v843_v12, %v839_v13 }
 0x745   :  { %v847_v15 = vsel %vm846_vm5, %v844_v14, 0.0 }
 0x75a   :  { %848 = vadd.xlane.f32.xlu0 %v847_v15 }
 0x770   :  { %1271 = vbcast.lane.b32.xlu0 %v1269_v38, 256 }
 0x7a9   :  { %v872_v22 = vpop.permute.xlu0 %871 }
 0x7aa   :  { %v875_v23 = vsel %vm874_vm6, %v872_v22, 0.0 }
 0x7ab   :  { %876 = vadd.xlane.f32.xlu1 %v875_v23 }
 0x7ad   :  { %v891_v20 = vpop.permute.xlu0 %890 }
 0x7ae   :  { %v893_v25 = vsel %vm874_vm6, %v891_v20, 0.0 }
 0x7af   :  { %894 = vadd.xlane.f32.xlu1 %v893_v25 }
 0x7b3   :  { %904 = vadd.xlane.f32.xlu1 %v903_v28 }
 0x7e7   :  { %v849_v32 = vpop.xlane.xlu0 %848 }
 0x7e8   :  { %v859_v42 = vadd.f32 %v858_v39, %v849_v32 }
 0x814   :  { %v994_v30 = vpop.f32.mrb[6].mxu1 }
 0x815   :  { %v1065_v31 = vadd.f32 %v1990_v27, %v994_v30  ;;  %v1526_v33 = vpop.f32.mrb[7].mxu1  ;;  %v1398_v27 = vld [vmem:[#allocation10 + $0x128] ss:$0 sm:$0xff] }
 0x817   :  { %v1143_v35 = vadd.f32 %v1139_v16, %v1065_v31 }
 0x819   :  { %v1149_v36 = vadd.f32 %v1401_v34, %v1143_v35 }
 0x81b   :  { %1546 = vmatmul.mubr.msk.f32.vlgmr.msra.gmra.mrb[8].mxu1 %vm268_vm2, %v1149_v36 }
 0x838   :  { %v877_v40 = vpop.xlane.xlu1 %876 }
 0x839   :  { %v878_v43 = vadd.f32 %v877_v40, %v859_v42 }
 0x83c   :  { %v895_v41 = vpop.xlane.xlu1 %894 }
 0x83d   :  { %v896_v45 = vadd.f32 %v895_v41, %v878_v43 }
 0x840   :  { %v905_v44 = vpop.xlane.xlu1 %904 }
 0x841   :  { %v906_v47 = vadd.f32 %v905_v44, %v896_v45 }
 0x843   :  { %v912_v48 = vadd.f32 %v1398_v27, %v906_v47 }
 0x845   :  { %v913_v49 = vmul.f32 0.5, %v912_v48 }
 0x847   :  { %1638 = vtanh.f32 %v913_v49 }
 0x851   :  { %v1639_v57 = vpop.eup %1638 }
 0x852   :  { %v915_v58 = vadd.f32 1.0, %v1639_v57 }
 0x854   :  { %v916_v60 = vmul.f32 0.5, %v915_v58 }
 0x856   :  { %v1248_v59 = vsub.f32 1.0, %v916_v60 }
 0x8ee   :  { %v1226_v51 = vpop.f32.mrb[8].mxu1 }
 0x8ef   :  { %v1227_v0 = vadd.f32 %v1402_v50, %v1226_v51  ;;  %v1547_v53 = vpop.f32.mrb[9].mxu1 }
 0x8f1   :  { %v1231_v55 = vsel %vm1230_vm7, %v1227_v0, -inf }
 0x8f2   :  { %1232 = vmax.xlane.f32.xlu1 %v1231_v55 }
 0x903   :  { %1251 = vperm.xlu1 %1621, %v1248_v59  }
 0x907   :  { %1278 = vbcast.lane.b32.xlu1 %v1276_v61, 256 }
 0x97f   :  { %v1233_v62 = vpop.xlane.xlu1 %1232 }
 0x980   :  { %v1234_v2 = vsub.f32 %v1227_v0, %v1233_v62 }
 0x982   :  { %v1235_v63 = vmul.f32 1.442695, %v1234_v2 }
 0x983   :  { %v1252_v3 = vpop.permute.xlu1 %1251 }
 0x984   :  { %1640 = vpow2.f32 %v1235_v63  ;;  %v1264_v4 = vmul.f32 %v2022_v52, %v1252_v3 }
 0x986   :  { %v1289_v5 = vrot.slane %v1264_v4, %v1992_v29  ;;  %v1296_v6 = vrot.slane %v1264_v4, %v1998_v46  ;;  %v1272_v46 = vpop.permute.xlu0 %1271 }
 0x987   :  { %v1279_v52 = vpop.permute.xlu1 %1278  ;;  %vm1280_vm9 = vcmp.eq.s32.totalorder %v2002_v56, %v1272_v46 }
 0x988   :  { %1291 = vbcast.lane.b32.xlu1 %v1289_v5, 256  ;;  %vm1281_vm8 = vcmp.eq.s32.totalorder %v2002_v56, %v1279_v52 }
 0x989   :  { %v1405_v12 = vsel %vm1281_vm8, 1.0, %v1793_v1 }
 0x98c   :  { %1298 = vbcast.lane.b32.xlu1 %v1296_v6, 256 }
 0x98e   :  { %v1641_v9 = vpop.eup %1640 }
 0x98f   :  { %v1237_v11 = vsel %vm1230_vm7, %v1641_v9, 0.0 }
 0x990   :  { %1238 = vadd.xlane.f32.xlu0 %v1237_v11  ;;  %1322 = vrot.lane.b32.xlu1 %v1979_v7, %s1802_s8  ;;  %v1404_v7 = vsel %vm1280_vm9, 1.0, %v1793_v1 }
 0x994   :  { %1328 = vrot.lane.b32.xlu1 %v2029_v8, %s1803_s16 }
 0x9a6   :  { %1244 = vperm.xlu0 %1620, %v916_v60  }
 0x9aa   :  { %1325 = vrot.lane.b32.xlu0 %v1959_v54, %s1804_s17 }
 0x9fa   :  { %v1292_v29 = vpop.permute.xlu1 %1291 }
 0x9fb   :  { %v1300_v15 = vmul.f32 %v1404_v7, %v1292_v29 }
 0x9fd   :  { %v1303_v16 = vsel %vm1302_vm10, %v1300_v15, 0.0 }
 0x9fe   :  { %v1299_v13 = vpop.permute.xlu1 %1298  ;;  %v1304_v17 = vrot.slane %v1303_v16, 4 }
 0x9ff   :  { %v1301_v14 = vmul.f32 %v1405_v12, %v1299_v13 }
 0xa00   :  { %v1305_v19 = vadd.f32 %v1304_v17, %v1303_v16 }
 0xa01   :  { %v1310_v8 = vsel %vm1302_vm10, %v1301_v14, 0.0 }
 0xa02   :  { %v1311_v54 = vrot.slane %v1310_v8, 4  ;;  %v1306_v23 = vrot.slane %v1305_v19, 2  ;;  %v1323_v25 = vpop.permute.xlu1 %1322 }
 0xa04   :  { %v1312_v18 = vadd.f32 %v1311_v54, %v1310_v8  ;;  %v1307_v20 = vadd.f32 %v1306_v23, %v1305_v19 }
 0xa06   :  { %v1313_v21 = vrot.slane %v1312_v18, 2  ;;  %v1308_v26 = vrot.slane %v1307_v20, 1  ;;  %v1329_v34 = vpop.permute.xlu1 %1328 }
 0xa07   :  { %v1350_v38 = vsel %vm1349_vm11, %v1329_v34, %v2006_v10 }
 0xa08   :  { %v1314_v24 = vadd.f32 %v1313_v21, %v1312_v18  ;;  %v1309_v33 = vadd.f32 %v1308_v26, %v1307_v20  ;;  %v1351_v41 = vsel %vm268_vm2, %v1350_v38, 0.0 }
 0xa0a   :  { %v1315_v56 = vrot.slane %v1314_v24, 1 }
 0xa0c   :  { %v1316_v28 = vadd.f32 %v1315_v56, %v1314_v24 }
 0xa0e   :  { %v1319_v36 = vsel %vm786_vm3, %v1316_v28, %v1309_v33 }
 0xa1d   :  { %v1239_v22 = vpop.xlane.xlu0 %1238 }
 0xa1e   :  { %1642 = vrcp.f32 %v1239_v22 }
 0xa25   :  { %v1245_v31 = vpop.permute.xlu0 %1244 }
 0xa28   :  { %v1643_v1 = vpop.eup %1642 }
 0xa29   :  { %v1241_v30 = vmul.f32 %v1643_v1, %v1641_v9  ;;  %v1326_v39 = vpop.permute.xlu0 %1325 }
 0xa2b   :  { %v1247_v35 = vmul.f32 %v1245_v31, %v1241_v30 }
 0xa2d   :  { %v1321_v37 = vadd.f32 %v1319_v36, %v1247_v35 }
 0xa2f   :  { %v1344_v40 = vsel %vm1302_vm10, %v1321_v37, %v1323_v25 }
 0xa30   :  { %v1346_v32 = vsel %vm1345_vm12, %v1344_v40, %v1326_v39 }
 0xa31   :  { %v1348_v42 = vsel %vm1347_vm13, %v1346_v32, %v1329_v34 }
 0xa32   :  { %v1354_v43 = vcombine.low %v1348_v42, %v1351_v41 }
 0xa34   :  { %1406 = vst.sshfl [vmem:[#allocation11] sm:$0x33 pattern:$0x76325410] %v1354_v43 }
 0xa35   :  { %1765 = shalt.err (!%p1762_p2)
}
 0xa36   :  { %s1766_s6 = scalar_lea.hbm %s2091_s9, 64 }
 0xa37   :  { %p1767_p3 = scmp.ne.s32.totalorder %s2091_s9, %s1766_s6  ;;  %p1770_p4 = scmp.lt.u32.totalorder %s1766_s6, %s2091_s9 }
 0xa39   :  { %p1772_p5 = pnand %p1770_p4, %p1767_p3 }
 0xa3b   :  { %1775 = shalt.err (!%p1772_p5)
}
 0xa3c   :  { %1373 = dma.vmem_to_hbm [thread:$0]  %s1371_s21, 64, %s2091_s9, [#allocation4]  }
 0xa3d   :  { %1782 = dma.done.wait [#allocation4], 64  }
 0xa3e   :  { %1783 = vsyncadd [#allocation4], 4294967232 }
 0xa3f   :  { %1377 = vsyncpa [#allocation3], 1 }
 0xa40   :  { %1378 = vsyncpa [#allocation6], 1 }
 0xa41   :  { %1379 = vsyncpa [#allocation9], 1 }
 0xa42   :  { %1380 = vsyncpa [#allocation4], 1 }

</bundles_post_ra>
